<compile_context>
chip_gen: v7x
topology: tpu7x:2x2x1
jax: 0.10.0
libtpu: 0.0.40
codegen_flags: <defaults>
</compile_context>

<pallas_src>
import functools
import math

import jax
import jax.numpy as jnp
from jax.experimental import pallas as pl
from jax.experimental.pallas import tpu as pltpu


# ----------------------------- helpers --------------------------------------
def _round_up(x, m):
    return (x + m - 1) // m * m


def _dropout_hash(seed_i32, rows_i32, cols_i32):
    """lowbias32-style integer mixer of (seed, row, col) in wrapping int32 arithmetic.

    Logical right shifts are emulated with arithmetic shift + mask so everything stays
    in plain int32 jnp ops (lowers on Mosaic and in interpret mode). Returns int32 bits
    uniformly distributed over the full int32 range.
    """
    h = seed_i32 + rows_i32 * (-1640531535) + cols_i32 * (-2048144789)  # 0x9E3779B1, 0x85EBCA6B
    h = h ^ ((h >> 16) & 0xFFFF)
    h = h * 2145916205                                                  # 0x7FEB352D
    h = h ^ ((h >> 15) & 0x1FFFF)
    h = h * (-2073384309)                                               # 0x846CA68B
    h = h ^ ((h >> 16) & 0xFFFF)
    return h


def _dropout_threshold_i32(p):
    """Signed threshold T such that P(hash >= T) == 1 - p for hash ~ U(int32)."""
    t = int(round(float(p) * 4294967296.0)) - 2147483648
    return max(-2147483648, min(2147483647, t))


# ----------------------------- fused kernel ---------------------------------
def _fused_lora_linear_kernel(slot_ref, seed_ref, thr_ref,        # scalar prefetch (SMEM)
                              x_ref, wT_ref, bias_ref,            # VMEM tiles
                              aT_ref, bT_ref,                     # VMEM adapter tiles
                              o_ref,                              # VMEM output tile
                              acc_ref, t_ref,                     # f32 scratch
                              *, tm, tk, apply_dropout):
    i = pl.program_id(0)
    j = pl.program_id(1)
    k = pl.program_id(2)
    nk = pl.num_programs(2)

    @pl.when(k == 0)
    def _init_acc():
        acc_ref[...] = jnp.zeros_like(acc_ref)

    x = x_ref[...]                                                # bf16 (tm, tk)

    # base linear: x @ W^T, f32 accumulation across K tiles on the MXU
    acc_ref[...] += jnp.dot(x, wT_ref[...], preferred_element_type=jnp.float32)

    # LoRA stage 1: dropout(x) @ (coef * A^T).  Only depends on (i, k), so it is done
    # once on the first output-column tile (j == 0); t_ref persists across j.
    # (scaling / (1 - p) is folded into A^T host-side, so only the keep-mask is needed.)
    @pl.when(j == 0)
    def _lora_stage1():
        @pl.when(k == 0)
        def _init_t():
            t_ref[...] = jnp.zeros_like(t_ref)
        slot = slot_ref[i]
        if apply_dropout:
            rows = jax.lax.broadcasted_iota(jnp.int32, x.shape, 0) + i * tm
            cols = jax.lax.broadcasted_iota(jnp.int32, x.shape, 1) + k * tk
            h = _dropout_hash(seed_ref[slot], rows, cols)
            masked = jnp.where(h >= thr_ref[slot], x, jnp.zeros_like(x))
        else:
            masked = x
        t_ref[...] += jnp.dot(masked, aT_ref[0], preferred_element_type=jnp.float32)

    # epilogue on the last K tile: LoRA stage 2 + bias + store (lane-dense tile)
    @pl.when(k == nk - 1)
    def _finalize():
        lora = jnp.dot(t_ref[...].astype(jnp.bfloat16), bT_ref[0],
                       preferred_element_type=jnp.float32)
        o_ref[...] = (acc_ref[...] + bias_ref[...] + lora).astype(o_ref.dtype)


# ----------------------------- module forward -------------------------------
def lora_linear_forward(data, weight, bias, adapters):
    """Equivalent of Linear.forward(data, input_args) with enable_lora_=True.

    data:     [B, S, IN] activations.
    weight:   [OUT, IN]  frozen base nn.Linear weight.
    bias:     [OUT]      frozen base nn.Linear bias.
    adapters: list of (start, end, lora_a [r, IN] | None, lora_b [OUT, r] | None,
                       dropout_p, scaling, seed); start/end index the batch dim.
    """
    B, S, IN = data.shape
    OUT = weight.shape[0]
    R = B * S
    out_dtype = data.dtype

    # --- tile sizes ----------------------------------------------------------
    # The row tile must respect adapter boundaries (adapters cover whole batch rows).
    g = R
    for (s, e, *_rest) in adapters:
        g = math.gcd(g, s * S)
        g = math.gcd(g, e * S)
    tm = math.gcd(g, 256)
    assert tm % 8 == 0 or tm == R, f"row tile {tm} is not sublane aligned"
    K_pad = _round_up(IN, 128)
    N_pad = _round_up(OUT, 128)
    tk = math.gcd(K_pad, 512)
    tn = math.gcd(N_pad, 256)

    # --- pack operands: bf16 MXU feeds, f32 bias, lane-aligned padding -------
    x2d = jnp.pad(data.reshape(R, IN).astype(jnp.bfloat16), ((0, 0), (0, K_pad - IN)))
    wT = jnp.pad(weight.T.astype(jnp.bfloat16), ((0, K_pad - IN), (0, N_pad - OUT)))
    bias_row = jnp.pad(bias.astype(jnp.float32).reshape(1, OUT), ((0, 0), (0, N_pad - OUT)))

    # --- stack adapters (rank padded to 128) + trailing all-zero slot --------
    r_pad = 128
    for a in adapters:
        if a[2] is not None:
            r_pad = max(r_pad, _round_up(a[2].shape[0], 128))
    aT_list, bT_list, seeds, thrs, slot_of = [], [], [], [], []
    for (s, e, la, lb, p, scaling, seed) in adapters:
        if la is None or lb is None:
            slot_of.append(None)
            continue
        p = float(p)
        assert 0.0 <= p < 1.0, "dropout probability must be in [0, 1)"
        coef = float(scaling) / (1.0 - p)                 # scaling * inverted-dropout gain
        r = la.shape[0]
        aT = (la.T.astype(jnp.float32) * coef).astype(jnp.bfloat16)
        bT = lb.T.astype(jnp.bfloat16)
        aT_list.append(jnp.pad(aT, ((0, K_pad - IN), (0, r_pad - r))))
        bT_list.append(jnp.pad(bT, ((0, r_pad - r), (0, N_pad - OUT))))
        seeds.append(int(seed) & 0x7FFFFFFF)
        thrs.append(_dropout_threshold_i32(p))
        slot_of.append(len(aT_list) - 1)
    # zero slot: rows not covered by an active adapter get a LoRA contribution of 0
    aT_list.append(jnp.zeros((K_pad, r_pad), jnp.bfloat16))
    bT_list.append(jnp.zeros((r_pad, N_pad), jnp.bfloat16))
    seeds.append(0)
    thrs.append(_dropout_threshold_i32(0.0))
    zero_slot = len(aT_list) - 1
    aT_stack = jnp.stack(aT_list)                         # [n_slots, K_pad, r_pad]
    bT_stack = jnp.stack(bT_list)                         # [n_slots, r_pad, N_pad]

    # --- per-row-block adapter slot table (scalar prefetch) ------------------
    n_blocks = R // tm
    block_slot = [zero_slot] * n_blocks
    for a, slot in zip(adapters, slot_of):
        if slot is None:
            continue
        s, e = a[0], a[1]
        for b in range(s * S // tm, e * S // tm):
            block_slot[b] = slot
    apply_dropout = any(
        (a[2] is not None and a[3] is not None and float(a[4]) > 0.0) for a in adapters)

    kernel = functools.partial(_fused_lora_linear_kernel,
                               tm=tm, tk=tk, apply_dropout=apply_dropout)
    out = pl.pallas_call(
        kernel,
        out_shape=jax.ShapeDtypeStruct((R, N_pad), out_dtype),
        grid_spec=pltpu.PrefetchScalarGridSpec(
            num_scalar_prefetch=3,
            grid=(n_blocks, N_pad // tn, K_pad // tk),
            in_specs=[
                pl.BlockSpec((tm, tk), lambda i, j, k, sl, sd, th: (i, k)),               # x
                pl.BlockSpec((tk, tn), lambda i, j, k, sl, sd, th: (k, j)),               # W^T
                pl.BlockSpec((1, tn), lambda i, j, k, sl, sd, th: (0, j)),                # bias
                pl.BlockSpec((1, tk, r_pad), lambda i, j, k, sl, sd, th: (sl[i], k, 0)),  # A^T
                pl.BlockSpec((1, r_pad, tn), lambda i, j, k, sl, sd, th: (sl[i], 0, j)),  # B^T
            ],
            out_specs=pl.BlockSpec((tm, tn), lambda i, j, k, sl, sd, th: (i, j)),
            scratch_shapes=[pltpu.VMEM((tm, tn), jnp.float32),
                            pltpu.VMEM((tm, r_pad), jnp.float32)]),
        compiler_params=pltpu.CompilerParams(
            # i is the only parallel axis: the LoRA stage-1 scratch (t_ref) is reused
            # across the j axis, so j/k must stay on one core per row block.
            dimension_semantics=("parallel", "arbitrary", "arbitrary")),
    )(jnp.asarray(block_slot, jnp.int32),
      jnp.asarray(seeds, jnp.int32),
      jnp.asarray(thrs, jnp.int32),
      x2d, wT, bias_row, aT_stack, bT_stack)
    return out[:, :OUT].reshape(B, S, OUT)


# ----------------------------- pure-JAX reference ---------------------------
def _reference_forward(data, weight, bias, adapters):
    """Pure-JAX mirror of the fused kernel's math (same hash-based dropout mask)."""
    B, S, IN = data.shape
    OUT = weight.shape[0]
    R = B * S
    x = data.reshape(R, IN).astype(jnp.bfloat16)
    out = jnp.dot(x, weight.T.astype(jnp.bfloat16), preferred_element_type=jnp.float32)
    out = out + bias.astype(jnp.float32)[None, :]
    for (s, e, la, lb, p, scaling, seed) in adapters:
        if la is None or lb is None:
            continue
        coef = float(scaling) / (1.0 - float(p))
        aT = (la.T.astype(jnp.float32) * coef).astype(jnp.bfloat16)
        bT = lb.T.astype(jnp.bfloat16)
        rows = jnp.arange(s * S, e * S, dtype=jnp.int32)[:, None]
        cols = jnp.arange(IN, dtype=jnp.int32)[None, :]
        h = _dropout_hash(jnp.int32(int(seed) & 0x7FFFFFFF), rows, cols)
        thr = _dropout_threshold_i32(p)
        xs = x[s * S:e * S]
        masked = jnp.where(h >= thr, xs, jnp.zeros_like(xs))
        t = jnp.dot(masked, aT, preferred_element_type=jnp.float32).astype(jnp.bfloat16)
        lora = jnp.dot(t, bT, preferred_element_type=jnp.float32)
        out = out.at[s * S:e * S].add(lora)
    return out.astype(data.dtype).reshape(B, S, OUT)


# ------------------------------------ main -----------------------------------
if __name__ == "__main__":
    # Small deterministic setup: B=4, S=8, IN=32, OUT=32, r=8, two adapters.
    B, S, IN, OUT, r = 4, 8, 32, 32, 8
    key = jax.random.PRNGKey(0)
    k_data, k_w, k_b, k_a0, k_b0, k_a1, k_b1 = jax.random.split(key, 7)

    data = jax.random.normal(k_data, (B, S, IN), dtype=jnp.float32).astype(jnp.bfloat16)

    # frozen base nn.Linear weights (deterministic synthetic init)
    weight = jax.random.normal(k_w, (OUT, IN), dtype=jnp.float32) * (1.0 / (IN ** 0.5))
    bias = jax.random.normal(k_b, (OUT,), dtype=jnp.float32) * 0.01

    # lora_a ~ kaiming_normal_(a=sqrt(5)); lora_b non-zero (replace_init path) so the
    # LoRA branch actually contributes.
    kaiming_std = (2.0 / 6.0) ** 0.5 / (IN ** 0.5)
    lora_a0 = jax.random.normal(k_a0, (r, IN), dtype=jnp.float32) * kaiming_std
    lora_a1 = jax.random.normal(k_a1, (r, IN), dtype=jnp.float32) * kaiming_std
    lora_b0 = jax.random.normal(k_b0, (OUT, r), dtype=jnp.float32) * 0.02
    lora_b1 = jax.random.normal(k_b1, (OUT, r), dtype=jnp.float32) * 0.02

    adapters = [
        # (start, end, lora_a, lora_b, dropout, scaling = alpha / r, seed)
        (0, 2, lora_a0, lora_b0, 0.10, 16.0 / r, 1234),
        (2, 4, lora_a1, lora_b1, 0.05, 16.0 / r, 5678),
    ]

    out = lora_linear_forward(data, weight, bias, adapters)
    out = jax.block_until_ready(out)
    assert out.shape == (B, S, OUT)
    assert bool(jnp.all(jnp.isfinite(out.astype(jnp.float32))))

    ref = _reference_forward(data, weight, bias, adapters)
    assert jnp.allclose(out.astype(jnp.float32), ref.astype(jnp.float32),
                        rtol=2e-2, atol=2e-2), "kernel output mismatch vs reference"
    print("KERNEL_OK")
</pallas_src>

<mosaic_0001>
module attributes {stable_mosaic.version = 11 : i64} {
  func.func @_fused_lora_linear_kernel(%arg0: i32, %arg1: i32, %arg2: i32, %arg3: memref<2xi32, #tpu.memory_space<smem>>, %arg4: memref<3xi32, #tpu.memory_space<smem>>, %arg5: memref<3xi32, #tpu.memory_space<smem>>, %arg6: memref<16x128xbf16, #tpu.memory_space<vmem>>, %arg7: memref<128x128xbf16, #tpu.memory_space<vmem>>, %arg8: memref<1x128xf32, #tpu.memory_space<vmem>>, %arg9: memref<1x128x128xbf16, #tpu.memory_space<vmem>>, %arg10: memref<1x128x128xbf16, #tpu.memory_space<vmem>>, %arg11: memref<16x128xbf16, #tpu.memory_space<vmem>>, %arg12: memref<16x128xf32, #tpu.memory_space<vmem>>, %arg13: memref<16x128xf32, #tpu.memory_space<vmem>>) attributes {dimension_semantics = [#tpu.dimension_semantics<parallel>, #tpu.dimension_semantics<arbitrary>, #tpu.dimension_semantics<arbitrary>], iteration_bounds = array<i64: 2, 1, 1>, scalar_prefetch = 3 : i64, scratch_operands = 2 : i64, tpu.core_type = #tpu.core_type<tc>, window_params = [{transform_indices = @transform_0, window_bounds = array<i64: 16, 128>}, {transform_indices = @transform_1, window_bounds = array<i64: 128, 128>}, {transform_indices = @transform_2, window_bounds = array<i64: 1, 128>}, {transform_indices = @transform_3, window_bounds = array<i64: 1, 128, 128>}, {transform_indices = @transform_4, window_bounds = array<i64: 1, 128, 128>}, {transform_indices = @transform_5, window_bounds = array<i64: 16, 128>}]} {
    %c0_i32 = arith.constant 0 : i32
    %0 = arith.cmpi eq, %arg2, %c0_i32 : i32
    %1 = arith.extui %0 : i1 to i32
    %c0_i32_0 = arith.constant 0 : i32
    %2 = arith.cmpi ne, %1, %c0_i32_0 : i32
    scf.if %2 {
      %cst_12 = arith.constant 0.000000e+00 : f32
      %15 = vector.broadcast %cst_12 : f32 to vector<16x128xf32>
      %c0_13 = arith.constant 0 : index
      %c0_14 = arith.constant 0 : index
      %16 = vector.load %arg12[%c0_13, %c0_14] : memref<16x128xf32, #tpu.memory_space<vmem>>, vector<16x128xf32>
      tpu.vector_store %arg12[%c0_13, %c0_14], %15 {strides = array<i32>} : memref<16x128xf32, #tpu.memory_space<vmem>>, vector<16x128xf32>,
    } else {
    }
    %c0 = arith.constant 0 : index
    %c0_1 = arith.constant 0 : index
    %3 = vector.load %arg6[%c0, %c0_1] : memref<16x128xbf16, #tpu.memory_space<vmem>>, vector<16x128xbf16>
    %c0_2 = arith.constant 0 : index
    %c0_3 = arith.constant 0 : index
    %4 = vector.load %arg12[%c0_2, %c0_3] : memref<16x128xf32, #tpu.memory_space<vmem>>, vector<16x128xf32>
    %c0_4 = arith.constant 0 : index
    %c0_5 = arith.constant 0 : index
    %5 = vector.load %arg7[%c0_4, %c0_5] : memref<128x128xbf16, #tpu.memory_space<vmem>>, vector<128x128xbf16>
    %cst = arith.constant dense<0.000000e+00> : vector<16x128xf32>
    %6 = tpu.matmul %3, %5, %cst {dimension_numbers = #tpu.dot_dimension_numbers<[1], [0], [0], [1], [0, 0, 1, 1], [], []>} : vector<16x128xbf16>, vector<128x128xbf16>, vector<16x128xf32> -> vector<16x128xf32>
    %7 = arith.addf %4, %6 : vector<16x128xf32>
    %c0_6 = arith.constant 0 : index
    %c0_7 = arith.constant 0 : index
    %8 = vector.load %arg12[%c0_6, %c0_7] : memref<16x128xf32, #tpu.memory_space<vmem>>, vector<16x128xf32>
    tpu.vector_store %arg12[%c0_6, %c0_7], %7 {strides = array<i32>} : memref<16x128xf32, #tpu.memory_space<vmem>>, vector<16x128xf32>,
    %c0_i32_8 = arith.constant 0 : i32
    %9 = arith.cmpi eq, %arg1, %c0_i32_8 : i32
    %10 = arith.extui %9 : i1 to i32
    %c0_i32_9 = arith.constant 0 : i32
    %11 = arith.cmpi ne, %10, %c0_i32_9 : i32
    scf.if %11 {
      %c0_i32_12 = arith.constant 0 : i32
      %15 = arith.cmpi eq, %arg2, %c0_i32_12 : i32
      %16 = arith.extui %15 : i1 to i32
      %c0_i32_13 = arith.constant 0 : i32
      %17 = arith.cmpi ne, %16, %c0_i32_13 : i32
      scf.if %17 {
        %cst_26 = arith.constant 0.000000e+00 : f32
        %68 = vector.broadcast %cst_26 : f32 to vector<16x128xf32>
        %c0_27 = arith.constant 0 : index
        %c0_28 = arith.constant 0 : index
        %69 = vector.load %arg13[%c0_27, %c0_28] : memref<16x128xf32, #tpu.memory_space<vmem>>, vector<16x128xf32>
        tpu.vector_store %arg13[%c0_27, %c0_28], %68 {strides = array<i32>} : memref<16x128xf32, #tpu.memory_space<vmem>>, vector<16x128xf32>,
      } else {
      }
      %18 = arith.index_cast %arg0 : i32 to index
      %19 = memref.load %arg3[%18] : memref<2xi32, #tpu.memory_space<smem>>
      %20 = tpu.iota {dimensions = array<i32: 0>} : vector<16x128xi32>
      %c16_i32 = arith.constant 16 : i32
      %21 = arith.muli %arg0, %c16_i32 : i32
      %22 = vector.broadcast %21 : i32 to vector<16x128xi32>
      %23 = arith.addi %20, %22 : vector<16x128xi32>
      %24 = tpu.iota {dimensions = array<i32: 1>} : vector<16x128xi32>
      %c128_i32 = arith.constant 128 : i32
      %25 = arith.muli %arg2, %c128_i32 : i32
      %26 = vector.broadcast %25 : i32 to vector<16x128xi32>
      %27 = arith.addi %24, %26 : vector<16x128xi32>
      %28 = arith.index_cast %19 : i32 to index
      %29 = memref.load %arg4[%28] : memref<3xi32, #tpu.memory_space<smem>>
      %c-1640531535_i32 = arith.constant -1640531535 : i32
      %30 = vector.broadcast %c-1640531535_i32 : i32 to vector<16x128xi32>
      %31 = arith.muli %23, %30 : vector<16x128xi32>
      %32 = vector.broadcast %29 : i32 to vector<16x128xi32>
      %33 = arith.addi %32, %31 : vector<16x128xi32>
      %c-2048144789_i32 = arith.constant -2048144789 : i32
      %34 = vector.broadcast %c-2048144789_i32 : i32 to vector<16x128xi32>
      %35 = arith.muli %27, %34 : vector<16x128xi32>
      %36 = arith.addi %33, %35 : vector<16x128xi32>
      %c16_i32_14 = arith.constant 16 : i32
      %37 = vector.broadcast %c16_i32_14 : i32 to vector<16x128xi32>
      %38 = arith.shrsi %36, %37 : vector<16x128xi32>
      %c65535_i32 = arith.constant 65535 : i32
      %39 = vector.broadcast %c65535_i32 : i32 to vector<16x128xi32>
      %40 = arith.andi %38, %39 : vector<16x128xi32>
      %41 = arith.xori %36, %40 : vector<16x128xi32>
      %c2145916205_i32 = arith.constant 2145916205 : i32
      %42 = vector.broadcast %c2145916205_i32 : i32 to vector<16x128xi32>
      %43 = arith.muli %41, %42 : vector<16x128xi32>
      %c15_i32 = arith.constant 15 : i32
      %44 = vector.broadcast %c15_i32 : i32 to vector<16x128xi32>
      %45 = arith.shrsi %43, %44 : vector<16x128xi32>
      %c131071_i32 = arith.constant 131071 : i32
      %46 = vector.broadcast %c131071_i32 : i32 to vector<16x128xi32>
      %47 = arith.andi %45, %46 : vector<16x128xi32>
      %48 = arith.xori %43, %47 : vector<16x128xi32>
      %c-2073384309_i32 = arith.constant -2073384309 : i32
      %49 = vector.broadcast %c-2073384309_i32 : i32 to vector<16x128xi32>
      %50 = arith.muli %48, %49 : vector<16x128xi32>
      %c16_i32_15 = arith.constant 16 : i32
      %51 = vector.broadcast %c16_i32_15 : i32 to vector<16x128xi32>
      %52 = arith.shrsi %50, %51 : vector<16x128xi32>
      %c65535_i32_16 = arith.constant 65535 : i32
      %53 = vector.broadcast %c65535_i32_16 : i32 to vector<16x128xi32>
      %54 = arith.andi %52, %53 : vector<16x128xi32>
      %55 = arith.xori %50, %54 : vector<16x128xi32>
      %56 = arith.index_cast %19 : i32 to index
      %57 = memref.load %arg5[%56] : memref<3xi32, #tpu.memory_space<smem>>
      %58 = vector.broadcast %57 : i32 to vector<16x128xi32>
      %59 = arith.cmpi sge, %55, %58 : vector<16x128xi32>
      %cst_17 = arith.constant 0.000000e+00 : bf16
      %60 = vector.broadcast %cst_17 : bf16 to vector<16x128xbf16>
      %61 = arith.select %59, %3, %60 : vector<16x128xi1>, vector<16x128xbf16>
      %c0_18 = arith.constant 0 : index
      %c0_19 = arith.constant 0 : index
      %62 = vector.load %arg13[%c0_18, %c0_19] : memref<16x128xf32, #tpu.memory_space<vmem>>, vector<16x128xf32>
      %c0_20 = arith.constant 0 : index
      %c0_21 = arith.constant 0 : index
      %c0_22 = arith.constant 0 : index
      %63 = vector.load %arg9[%c0_20, %c0_21, %c0_22] : memref<1x128x128xbf16, #tpu.memory_space<vmem>>, vector<1x128x128xbf16>
      %64 = vector.shape_cast %63 : vector<1x128x128xbf16> to vector<128x128xbf16>
      %cst_23 = arith.constant dense<0.000000e+00> : vector<16x128xf32>
      %65 = tpu.matmul %61, %64, %cst_23 {dimension_numbers = #tpu.dot_dimension_numbers<[1], [0], [0], [1], [0, 0, 1, 1], [], []>} : vector<16x128xbf16>, vector<128x128xbf16>, vector<16x128xf32> -> vector<16x128xf32>
      %66 = arith.addf %62, %65 : vector<16x128xf32>
      %c0_24 = arith.constant 0 : index
      %c0_25 = arith.constant 0 : index
      %67 = vector.load %arg13[%c0_24, %c0_25] : memref<16x128xf32, #tpu.memory_space<vmem>>, vector<16x128xf32>
      tpu.vector_store %arg13[%c0_24, %c0_25], %66 {strides = array<i32>} : memref<16x128xf32, #tpu.memory_space<vmem>>, vector<16x128xf32>,
    } else {
    }
    %c0_i32_10 = arith.constant 0 : i32
    %12 = arith.cmpi eq, %arg2, %c0_i32_10 : i32
    %13 = arith.extui %12 : i1 to i32
    %c0_i32_11 = arith.constant 0 : i32
    %14 = arith.cmpi ne, %13, %c0_i32_11 : i32
    scf.if %14 {
      %c0_12 = arith.constant 0 : index
      %c0_13 = arith.constant 0 : index
      %15 = vector.load %arg13[%c0_12, %c0_13] : memref<16x128xf32, #tpu.memory_space<vmem>>, vector<16x128xf32>
      %16 = arith.truncf %15 : vector<16x128xf32> to vector<16x128xbf16>
      %c0_14 = arith.constant 0 : index
      %c0_15 = arith.constant 0 : index
      %c0_16 = arith.constant 0 : index
      %17 = vector.load %arg10[%c0_14, %c0_15, %c0_16] : memref<1x128x128xbf16, #tpu.memory_space<vmem>>, vector<1x128x128xbf16>
      %18 = vector.shape_cast %17 : vector<1x128x128xbf16> to vector<128x128xbf16>
      %cst_17 = arith.constant dense<0.000000e+00> : vector<16x128xf32>
      %19 = tpu.matmul %16, %18, %cst_17 {dimension_numbers = #tpu.dot_dimension_numbers<[1], [0], [0], [1], [0, 0, 1, 1], [], []>} : vector<16x128xbf16>, vector<128x128xbf16>, vector<16x128xf32> -> vector<16x128xf32>
      %c0_18 = arith.constant 0 : index
      %c0_19 = arith.constant 0 : index
      %20 = vector.load %arg12[%c0_18, %c0_19] : memref<16x128xf32, #tpu.memory_space<vmem>>, vector<16x128xf32>
      %c0_20 = arith.constant 0 : index
      %c0_21 = arith.constant 0 : index
      %21 = vector.load %arg8[%c0_20, %c0_21] : memref<1x128xf32, #tpu.memory_space<vmem>>, vector<1x128xf32>
      %22 = vector.broadcast %21 : vector<1x128xf32> to vector<16x128xf32>
      %23 = arith.addf %20, %22 : vector<16x128xf32>
      %24 = arith.addf %23, %19 : vector<16x128xf32>
      %25 = arith.truncf %24 : vector<16x128xf32> to vector<16x128xbf16>
      %c0_22 = arith.constant 0 : index
      %c0_23 = arith.constant 0 : index
      %26 = vector.load %arg11[%c0_22, %c0_23] : memref<16x128xbf16, #tpu.memory_space<vmem>>, vector<16x128xbf16>
      tpu.vector_store %arg11[%c0_22, %c0_23], %25 {strides = array<i32>} : memref<16x128xbf16, #tpu.memory_space<vmem>>, vector<16x128xbf16>,
    } else {
    }
    return
  }
  func.func @transform_0(%arg0: i32, %arg1: i32, %arg2: i32, %arg3: memref<2xi32, #tpu.memory_space<smem>>, %arg4: memref<3xi32, #tpu.memory_space<smem>>, %arg5: memref<3xi32, #tpu.memory_space<smem>>) -> (i32, i32) {
    %c0_i32 = arith.constant 0 : i32
    return %arg0, %arg2 : i32, i32
  }
  func.func @transform_1(%arg0: i32, %arg1: i32, %arg2: i32, %arg3: memref<2xi32, #tpu.memory_space<smem>>, %arg4: memref<3xi32, #tpu.memory_space<smem>>, %arg5: memref<3xi32, #tpu.memory_space<smem>>) -> (i32, i32) {
    %c0_i32 = arith.constant 0 : i32
    return %arg2, %arg1 : i32, i32
  }
  func.func @transform_2(%arg0: i32, %arg1: i32, %arg2: i32, %arg3: memref<2xi32, #tpu.memory_space<smem>>, %arg4: memref<3xi32, #tpu.memory_space<smem>>, %arg5: memref<3xi32, #tpu.memory_space<smem>>) -> (i32, i32) {
    %c0_i32 = arith.constant 0 : i32
    %c0_i32_0 = arith.constant 0 : i32
    return %c0_i32, %arg1 : i32, i32
  }
  func.func @transform_3(%arg0: i32, %arg1: i32, %arg2: i32, %arg3: memref<2xi32, #tpu.memory_space<smem>>, %arg4: memref<3xi32, #tpu.memory_space<smem>>, %arg5: memref<3xi32, #tpu.memory_space<smem>>) -> (i32, i32, i32) {
    %0 = arith.index_cast %arg0 : i32 to index
    %1 = memref.load %arg3[%0] : memref<2xi32, #tpu.memory_space<smem>>
    %c0_i32 = arith.constant 0 : i32
    %c0_i32_0 = arith.constant 0 : i32
    return %1, %arg2, %c0_i32 : i32, i32, i32
  }
  func.func @transform_4(%arg0: i32, %arg1: i32, %arg2: i32, %arg3: memref<2xi32, #tpu.memory_space<smem>>, %arg4: memref<3xi32, #tpu.memory_space<smem>>, %arg5: memref<3xi32, #tpu.memory_space<smem>>) -> (i32, i32, i32) {
    %0 = arith.index_cast %arg0 : i32 to index
    %1 = memref.load %arg3[%0] : memref<2xi32, #tpu.memory_space<smem>>
    %c0_i32 = arith.constant 0 : i32
    %c0_i32_0 = arith.constant 0 : i32
    return %1, %c0_i32, %arg1 : i32, i32, i32
  }
  func.func @transform_5(%arg0: i32, %arg1: i32, %arg2: i32, %arg3: memref<2xi32, #tpu.memory_space<smem>>, %arg4: memref<3xi32, #tpu.memory_space<smem>>, %arg5: memref<3xi32, #tpu.memory_space<smem>>) -> (i32, i32) {
    %c0_i32 = arith.constant 0 : i32
    return %arg0, %arg1 : i32, i32
  }
}

</mosaic_0001>

<bundles_post_ra>
// kernel: tpu_custom_call.1
= control target key start
LH: loop header
LB: loop body
LE: loop exit
PB: predicated region body
PF: predicated region fallthrough
CT: control target
= control target key end

     0   :  { %s2250_s0 = inlined_call_operand.hbm [shape: s32[2], index: 0, kind: input, shape index: {}]   ;;  %s2251_s3 = inlined_call_operand.hbm [shape: bf16[32,128], index: 3, kind: input, shape index: {}]   ;;  %s2252_s4 = inlined_call_operand.hbm [shape: bf16[128,128], index: 4, kind: input, shape index: {}]   ;;  %s2253_s5 = inlined_call_operand.vmem [shape: f32[1,128], index: 5, kind: input, shape index: {}]   ;;  %s2254_s6 = inlined_call_operand.hbm [shape: bf16[3,128,128], index: 6, kind: input, shape index: {}]   ;;  %s2255_s7 = inlined_call_operand.hbm [shape: bf16[3,128,128], index: 7, kind: input, shape index: {}]   ;;  %s2256_s8 = inlined_call_operand.hbm [shape: bf16[32,128], index: 8, kind: output, shape index: {}]   ;;  %s2257_s1 = inlined_call_operand.vmem [shape: s32[3], index: 1, kind: input, shape index: {}]   ;;  %s2258_s2 = inlined_call_operand.vmem [shape: s32[3], index: 2, kind: input, shape index: {}]  }
   0x1   :  { %2277 = sst [smem:[#allocation32_spill]] %s2251_s3  ;;  %s1366_s29 = scalar_lea.hbm %s2250_s0, 16 }
   0x2   :  { %2278 = sst [smem:[#allocation33_spill]] %s2252_s4  ;;  %p1367_p0 = scmp.ne.s32.totalorder %s2250_s0, %s1366_s29 }
   0x3   :  { %2279 = sst [smem:[#allocation34_spill]] %s2253_s5  ;;  %p1370_p1 = scmp.lt.u32.totalorder %s1366_s29, %s2250_s0 }
   0x4   :  { %2280 = sst [smem:[#allocation35_spill]] %s2254_s6 }
   0x5   :  { %2281 = sst [smem:[#allocation36_spill]] %s2256_s8  ;;  %p1372_p2 = pnand %p1370_p1, %p1367_p0 }
   0x7   :  { %1375 = shalt.err (!%p1372_p2)  }
   0x8   :  { %s1664_s12 = smov [#allocation5]   ;;  %s15_s17 = sshll.u32 %s2257_s1, 4  ;;  %s16_s17 = int_to_ptr.vmem [resolvable:$true] %s15_s17 }
   0x9   :  { %14 = dma.hbm_to_smem %s2250_s0, 16, %s1664_s12, [#allocation4] }
   0xa   :  { %s19_s20 = sshll.u32 %s2258_s2, 4  ;;  %s1376_s21 = scalar_lea.vmem %s16_s17, 16  ;;  %s20_s20 = int_to_ptr.vmem [resolvable:$true] %s19_s20 }
   0xb   :  { %p1377_p3 = scmp.ne.s32.totalorder %s16_s17, %s1376_s21  ;;  %p1381_p4 = scmp.lt.s32.totalorder %s16_s17, %s16_s17 }
   0xc   :  { %p1382_p5 = scmp.lt.s32.totalorder %s1376_s21, %s1376_s21 }
   0xe   :  { %p1383_p6 = por %p1382_p5, %p1381_p4 }
  0x10   :  { %p1384_p7 = pnand %p1383_p6, %p1377_p3 }
  0x12   :  { %1387 = shalt.err (!%p1384_p7)  }
  0x13   :  { %s1665_s22 = smov [#allocation6]   ;;  %s1388_s0 = scalar_lea.vmem %s20_s20, 16 }
  0x14   :  { %18 = dma.vmem_to_smem %s16_s17, 16, %s1665_s22, [#allocation4] }
  0x15   :  { %p1389_p8 = scmp.ne.s32.totalorder %s20_s20, %s1388_s0  ;;  %p1393_p9 = scmp.lt.s32.totalorder %s20_s20, %s20_s20 }
  0x16   :  { %p1394_p10 = scmp.lt.s32.totalorder %s1388_s0, %s1388_s0 }
  0x18   :  { %p1395_p11 = por %p1394_p10, %p1393_p9 }
  0x1a   :  { %p1396_p12 = pnand %p1395_p11, %p1389_p8 }
  0x1c   :  { %1399 = shalt.err (!%p1396_p12)  }
  0x1d   :  { %s1666_s1 = smov [#allocation7]  }
  0x1e   :  { %22 = dma.vmem_to_smem %s20_s20, 16, %s1666_s1, [#allocation4] }
  0x1f   :  { %1594 = dma.done.wait [#allocation4], 48 }
  0x20   :  { %1595 = vsyncadd [#allocation4], 4294967248 }
  0x21   :  { %24 = sfence }
  0x22   :  { %25 = vsyncpa [#allocation9], 0 }
  0x23   :  { %27 = vsyncpa [#allocation9 + $0x1], 0 }
  0x24   :  { %28 = vsyncpa [#allocation12], 0 }
  0x25   :  { %29 = vsyncpa [#allocation10], 0 }
  0x26   :  { %31 = vsyncpa [#allocation10 + $0x1], 0  ;;  %s1741_s2 = smov 0   ;;  %s1743_s23 = smov 0  }
  0x27   :  { %s1745_s24 = smov 0   ;;  %s1747_s25 = smov 0  }
  0x28   :  { %s1749_s26 = smov 0   ;;  %s1751_s27 = smov 0  }
  0x29   :  { %s1753_s28 = smov 0   ;;  %s1755_s29 = smov 0  }
  0x2a   :  { %s1757_s30 = smov 0   ;;  %s1759_s9 = smov 0  }
  0x2b   :  { %s1761_s10 = smov 0   ;;  %s1763_s11 = smov 0  }
  0x2c LB: > { %2282 = sst [smem:[#allocation26_spill]] %s1638_s27  ;;  %s1028_s12 = sadd.s32 4294967294, %s1662_s11   ;;  %s1662_s11 = sphi %s1763_s11, %s37_s11   ;;  %s1658_s10 = sphi %s1761_s10, %s2341_s10   ;;  %s1654_s9 = sphi %s1759_s9, %s2340_s9   ;;  %s1650_s30 = sphi %s1757_s30, %s2339_s30   ;;  %s1646_s29 = sphi %s1755_s29, %s2338_s29   ;;  %s1642_s28 = sphi %s1753_s28, %s2337_s28   ;;  %s1638_s27 = sphi %s1751_s27, %s2328_s27   ;;  %s1634_s26 = sphi %s1749_s26, %s2336_s26   ;;  %s1630_s25 = sphi %s1747_s25, %s2335_s25   ;;  %s1626_s24 = sphi %s1745_s24, %s2334_s24   ;;  %s1622_s23 = sphi %s1743_s23, %s2333_s23   ;;  %s1618_s2 = sphi %s1741_s2, %s2332_s2  }
  0x2d   : > { %2283 = sst [smem:[#allocation27_spill]] %s1650_s30  ;;  %s56_s13 = sadd.s32 1, %s1658_s10 }
  0x2e   : > { %p58_p13 = scmp.ge.s32.totalorder %s56_s13, 2  ;;  %s65_s14 = sadd.s32 1, %s1650_s30 }
  0x2f   : > { %p2261_p0 = scmp.ne.s32.totalorder %s1650_s30, %s1646_s29  ;;  %p2264_p1 = scmp.eq.s32.totalorder %s1662_s11, 0 }
  0x30   : > { %s2343_s13 = smov (%p58_p13, %s56_s13), 0  ;;  %p2262_p3 = scmp.ne.s32.totalorder %s1646_s29, %s1642_s28 }
  0x31   : > { %2284 = sst [smem:[#allocation28_spill]] %s2343_s13  ;;  %p1814_p2 = por %p2264_p1, %p2261_p0 }
  0x32   : > { %s60_s16 = ssub.s32 %s1658_s10, %s2343_s13  ;;  %s1823_s17 = sld [smem:[#allocation5 + %s2343_s13]] }
  0x33   : > { %p63_p4 = scmp.eq.s32.totalorder %s60_s16, 0  ;;  %s1826_s18 = sld [smem:[#allocation5 + %s2343_s13]] }
  0x34   : > { %p224_p5 = scmp.eq.s32.totalorder %s1028_s12, 1  ;;  %p2263_p8 = scmp.lt.s32.totalorder %s1662_s11, 2 }
  0x35   : > { %s1829_s19 = scalar_select %p63_p4, %s1650_s30, %s65_s14  }
  0x36   : > { %p1834_p6 = por %p224_p5, %p2262_p3  ;;  %s267_s21 = sand.u32 1, %s1662_s11  }
  0x37   : > { %2286 = sst [smem:[#allocation29_spill]] %s1829_s19  ;;  %s269_s22 = sand.u32 1, %s1650_s30  }
  0x38   : > { %s2287_s20 = scalar_select %p1834_p6, 1, 0 }
  0x39   : > { %s1033_s0 = sshll.u32 %s269_s22, 3  ;;  %s1089_s1 = sshll.u32 %s1658_s10, 7 }
  0x3a   : > { %2288 = sst [smem:[#allocation30_spill]] %s2287_s20  ;;  %s2289_s3 = sld [smem:[#allocation32_spill]] }
  0x3b   : > { %s271_s12 = scalar_lea.vmem [#allocation8], %s1033_s0  ;;  %p1854_p9 = pnand %p2263_p8, %p1814_p2 }
  0x3c   : > { %s279_s14 = sshll.u32 %s271_s12, 4  ;;  %s1858_s22 = scalar_lea.sflag [#allocation9], %s267_s21  ;;  %s1848_s14 = int_to_ptr.vmem [resolvable:$true] %s279_s14 }
  0x3d   : > { %p1402_p11 = pneg %p1854_p9 }
  0x40   : > { %s1846_s16 = scalar_lea.hbm %s2289_s3, %s1089_s1  ;;  %s1405_s15 = scalar_lea.hbm %s2289_s3, 256 }
  0x41   : > { %s1400_s5 = scalar_lea.hbm %s1846_s16, 128  ;;  %p1406_p2 = scmp.lt.u32.totalorder %s1846_s16, %s2289_s3 }
  0x42   : > { %p1401_p10 = scmp.ne.s32.totalorder %s1846_s16, %s1400_s5  ;;  %p1407_p4 = scmp.lt.u32.totalorder %s1405_s15, %s1400_s5 }
  0x43   : > { %p1409_p7 = scmp.lt.u32.totalorder %s1400_s5, %s1846_s16 }
  0x44   : > { %p1403_p12 = pnand %p1402_p11, %p1401_p10  ;;  %p1408_p5 = por %p1407_p4, %p1406_p2 }
  0x46   : > { %p1404_p13 = pneg %p1403_p12  ;;  %p1410_p0 = por %p1409_p7, %p1408_p5 }
  0x48   : > { %p1411_p3 = pnand %p1410_p0, %p1404_p13 }
  0x4a   : > { %1414 = shalt.err (!%p1411_p3)
}
  0x4b   : > { %s1415_s21 = scalar_lea.vmem %s1848_s14, 128  ;;  %s1667_s8 = smov [#allocation8]  }
  0x4c   : > { %p1416_p10 = scmp.ne.s32.totalorder %s1848_s14, %s1415_s21  ;;  %s1420_s0 = sshll.u32 %s1667_s8, 4  ;;  %s1421_s0 = int_to_ptr.vmem [resolvable:$false] %s1420_s0 }
  0x4d   : > { %s1422_s1 = scalar_lea.vmem %s1421_s0, 256  ;;  %p1423_p1 = scmp.lt.s32.totalorder %s1848_s14, %s1421_s0 }
  0x4e   : > { %p1418_p12 = pnand %p1416_p10, %p1402_p11  ;;  %p1424_p2 = scmp.lt.s32.totalorder %s1422_s1, %s1415_s21 }
  0x50   : > { %p1419_p8 = pneg %p1418_p12  ;;  %p1425_p4 = por %p1424_p2, %p1423_p1 }
  0x52   : > { %p1426_p7 = pnand %p1425_p4, %p1419_p8 }
  0x54   : > { %1429 = shalt.err (!%p1426_p7)
}
  0x55   : > { %s2265_s5 = smov 64   ;;  %s2267_s15 = smov 4  }
  0x56   : > { %1216 = dma.hbm_to_vmem [thread:$0]  (!%p1854_p9), %s1846_s16, 128, %s1848_s14, %s1858_s22, %s2265_s5, %s2265_s5, %s2267_s15  }
  0x57   : > { %s142_s12 = sld [smem:[#allocation5 + %s1658_s10]]  ;;  %s149_s21 = sadd.s32 1, %s1638_s27 }
  0x58   : > { %p156_p0 = scmp.ne.s32.totalorder %s1638_s27, %s1634_s26  ;;  %p162_p1 = scmp.ne.s32.totalorder %s1634_s26, %s1630_s25 }
  0x59   : > { %s291_s8 = sand.u32 1, %s1638_s27   ;;  %p2291_p3 = scmp.eq.s32.totalorder %s1662_s11, 0 }
  0x5a   : > { %s1036_s0 = sshll.u32 %s291_s8, 6  ;;  %p2293_p11 = scmp.lt.s32.totalorder %s1662_s11, 2 }
  0x5b   : > { %p158_p8 = por %p156_p0, %p2291_p3  ;;  %s293_s16 = scalar_lea.vmem [#allocation13], %s1036_s0 }
  0x5c   : > { %s303_s14 = sshll.u32 %s293_s16, 4  ;;  %p2294_p13 = pmov %p2293_p11  ;;  %s1899_s14 = int_to_ptr.vmem [resolvable:$true] %s303_s14 }
  0x5d   : > { %s1196_s1 = scalar_select %p158_p8, [#allocation5], [#allocation16] }
  0x5e   : > { %s144_s13 = ssub.s32 %s142_s12, %s1823_s17  ;;  %p2295_p5 = pmov %p2293_p11 }
  0x5f   : > { %p147_p9 = scmp.eq.s32.totalorder %s144_s13, 0  ;;  %s2345_s1 = smov (!%p2293_p11, %s1196_s1), [#allocation18] }
  0x60   : > { %s1197_s5 = scalar_select %p158_p8, %s1658_s10, 0 }
  0x61   : > { %s1903_s15 = scalar_select %p147_p9, %s1638_s27, %s149_s21  }
  0x62   : > { %s2347_s5 = smov (!%p2294_p13, %s1197_s5), 0  ;;  %p1911_p10 = pnand %p2295_p5, %p158_p8 }
  0x63   : > { %2292 = sst [smem:[#allocation31_spill]] %s1903_s15  ;;  %s1916_s8 = sadd.s32 4294967295, %s1662_s11  }
  0x64   : > { %s294_s12 = sld [smem:[%s2345_s1 + %s2347_s5]]  ;;  %p2271_p12 = scmp.eq.s32.totalorder %s1916_s8, 0 }
  0x65   : > { %p218_p2 = scmp.eq.s32.totalorder %s1916_s8, 1  ;;  %p1029_p4 = scmp.ge.s32.totalorder %s1662_s11, 1 }
  0x66   : > { %p2297_p7 = scmp.ne.s32.totalorder %s1646_s29, %s1642_s28  ;;  %p1935_p3 = por %p162_p1, %p2271_p12 }
  0x67   : > { %p2300_p8 = scmp.ne.s32.totalorder %s1650_s30, %s1646_s29  ;;  %p231_p11 = scmp.lt.s32.totalorder %s1662_s11, 3 }
  0x68   : > { %p1926_p0 = por %p2271_p12, %p2297_p7  ;;  %s2303_s6 = sld [smem:[#allocation35_spill]] }
  0x69   : > { %s2299_s5 = scalar_select %p1935_p3, 1, 0 }
  0x6a   : > { %s2298_s21 = scalar_select %p1926_p0, 1, 0 }
  0x6b   : > { %p1942_p9 = por %p218_p2, %p2300_p8  ;;  %s1090_s1 = sshll.u32 %s294_s12, 10 }
  0x6c   : > { %p1947_p13 = pnand %p1029_p4, %p231_p11  ;;  %s1670_s25 = smov [#allocation11]  }
  0x6d   : > { %s2301_s0 = scalar_select %p1942_p9, 1, 0 }
  0x6e   : > { %s2302_s13 = scalar_select %p1947_p13, 1, 0 }
  0x6f   : > { %s1954_s19 = scalar_lea.hbm %s2303_s6, %s1090_s1  ;;  %s1956_s30 = sshll.u32 %s1670_s25, 4  ;;  %s248_s30 = int_to_ptr.vmem [resolvable:$true] %s1956_s30 }
  0x70   : > { %s1430_s15 = scalar_lea.hbm %s1954_s19, 1024  ;;  %p1432_p5 = pneg %p1911_p10 }
  0x71   : > { %p1431_p1 = scmp.ne.s32.totalorder %s1954_s19, %s1430_s15  ;;  %s1435_s3 = scalar_lea.hbm %s2303_s6, 3072 }
  0x72   : > { %p1436_p7 = scmp.lt.u32.totalorder %s1954_s19, %s2303_s6  ;;  %p1437_p8 = scmp.lt.u32.totalorder %s1435_s3, %s1430_s15 }
  0x73   : > { %p1433_p2 = pnand %p1432_p5, %p1431_p1  ;;  %p1439_p12 = scmp.lt.u32.totalorder %s1430_s15, %s1954_s19 }
  0x74   : > { %p1438_p11 = por %p1437_p8, %p1436_p7 }
  0x75   : > { %p1434_p4 = pneg %p1433_p2 }
  0x76   : > { %p1440_p6 = por %p1439_p12, %p1438_p11 }
  0x78   : > { %p1441_p9 = pnand %p1440_p6, %p1434_p4 }
  0x7a   : > { %1444 = shalt.err (!%p1441_p9)
}
  0x7b   : > { %s1445_s25 = scalar_lea.vmem %s1899_s14, 1024  ;;  %s1671_s27 = smov [#allocation13]  }
  0x7c   : > { %p1446_p1 = scmp.ne.s32.totalorder %s1899_s14, %s1445_s25  ;;  %s1450_s12 = sshll.u32 %s1671_s27, 4  ;;  %s1451_s12 = int_to_ptr.vmem [resolvable:$false] %s1450_s12 }
  0x7d   : > { %s1452_s1 = scalar_lea.vmem %s1451_s12, 2048  ;;  %p1453_p0 = scmp.lt.s32.totalorder %s1899_s14, %s1451_s12 }
  0x7e   : > { %p1448_p2 = pnand %p1446_p1, %p1432_p5  ;;  %p1454_p7 = scmp.lt.s32.totalorder %s1452_s1, %s1445_s25 }
  0x80   : > { %p1449_p3 = pneg %p1448_p2  ;;  %p1455_p8 = por %p1454_p7, %p1453_p0 }
  0x82   : > { %p1456_p12 = pnand %p1455_p8, %p1449_p3 }
  0x84   : > { %1459 = shalt.err (!%p1456_p12)
}
  0x85   : > { %s2304_s15 = smov 4   ;;  %s2305_s3 = smov 64  }
  0x86   : > { %1221 = dma.hbm_to_vmem [thread:$0]  (!%p1911_p10), %s1954_s19, 1024, %s1899_s14, %s1858_s22, %s2305_s3, %s2305_s3, %s2304_s15  }
  0x87   : > { %p1209_p6 = pneg %p1947_p13  ;;  %p2306_p9 = scmp.eq.s32.totalorder %s1916_s8, 0 }
  0x88   : > { %s2308_s4 = sld [smem:[#allocation33_spill]] }
  0x89   : > { %p1992_p5 = pnand %p1209_p6, %p2306_p9 }
  0x8b   : > { %p1462_p3 = pneg %p1992_p5 }
  0x8e   : > { %s1460_s27 = scalar_lea.hbm %s2308_s4, 1024 }
  0x8f   : > { %p1461_p0 = scmp.ne.s32.totalorder %s2308_s4, %s1460_s27  ;;  %p1467_p11 = scmp.lt.u32.totalorder %s1460_s27, %s2308_s4 }
  0x91   : > { %p1463_p10 = pnand %p1462_p3, %p1461_p0 }
  0x93   : > { %p1464_p4 = pneg %p1463_p10 }
  0x95   : > { %p1469_p1 = pnand %p1467_p11, %p1464_p4 }
  0x97   : > { %1472 = shalt.err (!%p1469_p1)
}
  0x98   : > { %s1473_s6 = scalar_lea.vmem %s248_s30, 1024  ;;  %p1481_p12 = scmp.lt.s32.totalorder %s248_s30, %s248_s30 }
  0x99   : > { %p1474_p2 = scmp.ne.s32.totalorder %s248_s30, %s1473_s6  ;;  %p1482_p6 = scmp.lt.s32.totalorder %s1473_s6, %s1473_s6 }
  0x9b   : > { %p1476_p7 = pnand %p1474_p2, %p1462_p3  ;;  %p1483_p9 = por %p1482_p6, %p1481_p12 }
  0x9d   : > { %p1477_p8 = pneg %p1476_p7 }
  0x9f   : > { %p1484_p13 = pnand %p1483_p9, %p1477_p8 }
  0xa1   : > { %1487 = shalt.err (!%p1484_p13)
}
  0xa2   : > { %1212 = dma.hbm_to_vmem [thread:$0]  (!%p1992_p5), %s2308_s4, 1024, %s248_s30, [#allocation12], %s2305_s3, %s2305_s3, %s2304_s15  }
  0xa3   : > { %s172_s6 = sld [smem:[#allocation5 + %s1658_s10]]  ;;  %p186_p13 = scmp.ne.s32.totalorder %s1626_s24, %s1622_s23 }
  0xa4   : > { %p192_p0 = scmp.ne.s32.totalorder %s1622_s23, %s1618_s2  ;;  %p2309_p3 = scmp.eq.s32.totalorder %s1916_s8, 0 }
  0xa5   : > { %s315_s27 = sand.u32 1, %s1626_s24   ;;  %p2311_p4 = scmp.eq.s32.totalorder %s1662_s11, 0 }
  0xa6   : > { %p2022_p10 = por %p192_p0, %p2309_p3  ;;  %s179_s12 = sadd.s32 1, %s1626_s24 }
  0xa7   : > { %p188_p11 = por %p186_p13, %p2311_p4  ;;  %s1039_s19 = sshll.u32 %s315_s27, 6 }
  0xa8   : > { %p2312_p2 = scmp.lt.s32.totalorder %s1662_s11, 2  ;;  %s317_s4 = scalar_lea.vmem [#allocation14], %s1039_s19 }
  0xa9   : > { %s174_s1 = ssub.s32 %s172_s6, %s1826_s18  ;;  %s326_s18 = sshll.u32 %s317_s4, 4  ;;  %s2045_s18 = int_to_ptr.vmem [resolvable:$true] %s326_s18 }
  0xaa   : > { %p177_p1 = scmp.eq.s32.totalorder %s174_s1, 0  ;;  %p2033_p7 = pnand %p2312_p2, %p188_p11 }
  0xab   : > { %s1199_s2 = scalar_select %p188_p11, [#allocation5], [#allocation17] }
  0xac   : > { %s2038_s30 = scalar_select %p177_p1, %s1626_s24, %s179_s12  }
  0xad   : > { %s1200_s25 = scalar_select %p188_p11, %s1658_s10, 0 }
  0xae   : > { %p2314_p5 = pmov %p2312_p2  ;;  %p2315_p8 = pmov %p2312_p2 }
  0xaf   : > { %p1490_p6 = pneg %p2033_p7 }
  0xb0   : > { %s2349_s2 = smov (!%p2314_p5, %s1199_s2), [#allocation19]  ;;  %s2351_s25 = smov (!%p2315_p8, %s1200_s25), 0 }
  0xb1   : > { %s318_s17 = sld [smem:[%s2349_s2 + %s2351_s25]]  ;;  %s1493_s2 = scalar_lea.hbm %s2255_s7, 3072 }
  0xb7   : > { %s1091_s6 = sshll.u32 %s318_s17, 10 }
  0xb8   : > { %s2050_s20 = scalar_lea.hbm %s2255_s7, %s1091_s6 }
  0xb9   : > { %s1488_s12 = scalar_lea.hbm %s2050_s20, 1024  ;;  %p1494_p0 = scmp.lt.u32.totalorder %s2050_s20, %s2255_s7 }
  0xba   : > { %p1489_p12 = scmp.ne.s32.totalorder %s2050_s20, %s1488_s12  ;;  %p1495_p3 = scmp.lt.u32.totalorder %s1493_s2, %s1488_s12 }
  0xbb   : > { %p1497_p11 = scmp.lt.u32.totalorder %s1488_s12, %s2050_s20 }
  0xbc   : > { %p1491_p9 = pnand %p1490_p6, %p1489_p12  ;;  %p1496_p4 = por %p1495_p3, %p1494_p0 }
  0xbe   : > { %p1492_p13 = pneg %p1491_p9  ;;  %p1498_p1 = por %p1497_p11, %p1496_p4 }
  0xc0   : > { %p1499_p2 = pnand %p1498_p1, %p1492_p13 }
  0xc2   : > { %1502 = shalt.err (!%p1499_p2)
}
  0xc3   : > { %s1503_s6 = scalar_lea.vmem %s2045_s18, 1024  ;;  %s1672_s27 = smov [#allocation14]  }
  0xc4   : > { %p1504_p5 = scmp.ne.s32.totalorder %s2045_s18, %s1503_s6  ;;  %s1508_s1 = sshll.u32 %s1672_s27, 4  ;;  %s1509_s1 = int_to_ptr.vmem [resolvable:$false] %s1508_s1 }
  0xc5   : > { %s1510_s4 = scalar_lea.vmem %s1509_s1, 2048  ;;  %p1511_p9 = scmp.lt.s32.totalorder %s2045_s18, %s1509_s1 }
  0xc6   : > { %p1506_p8 = pnand %p1504_p5, %p1490_p6  ;;  %p1512_p0 = scmp.lt.s32.totalorder %s1510_s4, %s1503_s6 }
  0xc8   : > { %p1507_p12 = pneg %p1506_p8  ;;  %p1513_p3 = por %p1512_p0, %p1511_p9 }
  0xca   : > { %p1514_p4 = pnand %p1513_p3, %p1507_p12 }
  0xcc   : > { %1517 = shalt.err (!%p1514_p4)
}
  0xcd   : > { %1226 = dma.hbm_to_vmem [thread:$0]  (!%p2033_p7), %s2050_s20, 1024, %s2045_s18, %s1858_s22, %s2305_s3, %s2305_s3, %s2304_s15  }
  0xce   : > { %p2316_p6 = scmp.ne.s32.totalorder %s2302_s13, 0 }
  0xcf   : > { %s340_s12 = sand.u32 (!%p2316_p6), 1, %s1916_s8   ;;  %s342_s19 = sand.u32 (!%p2316_p6), 1, %s1646_s29  }
  0xd0   : > { %338 = sbr.rel (%p2316_p6) target bundleno = 715 (0x2cb), region = 40  ;;  %s2087_s2 = sshll.u32 (!%p2316_p6), %s342_s19, 3 }
  0xd1   : > { %s341_s14 = scalar_lea.sflag (!%p2316_p6), [#allocation9], %s340_s12  ;;  %s344_s25 = scalar_lea.vmem (!%p2316_p6), [#allocation8], %s2087_s2 }
  0xd2   : > { %p2317_p13 = scmp.ne.s32.totalorder (!%p2316_p6), %s2298_s21, 0 }
  0xd7   : > { %1597 = dma.done.wait (%p2317_p13), %s341_s14, 128  }
  0xd8   : > { %1599 = vsyncadd (%p2317_p13), %s341_s14, 4294967168  ;;  %p2318_p7 = scmp.eq.s32.totalorder %s1916_s8, 0 }
  0xda   : > { %1601 = dma.done.wait (%p2318_p7), [#allocation12], 1024   ;;  %p2319_p11 = pmov %p2318_p7 }
  0xdb   : > { %s355_s20 = sand.u32 1, %s1634_s26   ;;  %p2320_p1 = scmp.ne.s32.totalorder %s2299_s5, 0 }
  0xdc   : > { %1603 = vsyncadd (%p2319_p11), [#allocation12], 4294966272  ;;  %s1045_s22 = sshll.u32 %s355_s20, 6 }
  0xdd   : > { %s2099_s13 = scalar_lea.vmem [#allocation13], %s1045_s22 }
  0xde   : > { %1605 = dma.done.wait (%p2320_p1), %s341_s14, 1024  }
  0xdf   : > { %1607 = vsyncadd (%p2320_p1), %s341_s14, 4294966272  ;;  %s364_s21 = sand.u32 1, %s1622_s23  }
  0xe0   : > { %s1046_s15 = sshll.u32 %s364_s21, 6 }
  0xe1   : > { %s2106_s3 = scalar_lea.vmem [#allocation14], %s1046_s15 }
  0xe2   : > { %1609 = dma.done.wait (%p2022_p10), %s341_s14, 1024  }
  0xe3   : > { %1611 = vsyncadd (%p2022_p10), %s341_s14, 4294966272  ;;  %v551_v0 = vlaneseq  ;;  %s1057_s8 = sshll.u32 %s1654_s9, 4  ;;  %v1673_v1 = vmov 0.0   ;;  %vm1674_vm0 = vmmov 0   ;;  %s2117_s5 = sld [smem:[#allocation5 + %s1654_s9]]  ;;  %v1341_v6 = vld [vmem:[%s2099_s13] sm:$0xff]  }
  0xe4   : > { %1147 = vmatprep.subr.bf16.mxu1 %v1673_v1  ;;  %1163 = vmatprep.mubr.msk.bf16.mxu1 %vm1674_vm0, %v1673_v1  ;;  %v555_v3 = vstv %s1057_s8  ;;  %v1342_v8 = vld [vmem:[%s2099_s13 + $0x8] sm:$0xff]   ;;  %v1343_v12 = vld [vmem:[%s2099_s13 + $0x10] sm:$0xff]   ;;  %v1349_v17 = vld [vmem:[#allocation11] sm:$0xff]   ;;  %s2321_s27 = sld [smem:[#allocation34_spill]]  ;;  %s405_s1 = scalar_lea.vmem [#allocation15], %s2087_s2 }
  0xe5   : > { %v552_v2 = vshrl.u32 %v551_v0, 7  ;;  %1127 = vmatprep.subr.bf16.mxu0 %v1673_v1  ;;  %1143 = vmatprep.mubr.msk.bf16.mxu0 %vm1674_vm0, %v1673_v1  ;;  %v559_v7 = vand.u32 127, %v551_v0  ;;  %v1344_v18 = vld [vmem:[%s2099_s13 + $0x18] sm:$0xff]   ;;  %v1350_v21 = vld [vmem:[#allocation11 + $0x8] sm:$0xff]   ;;  %v1345_v23 = vld [vmem:[%s2099_s13 + $0x20] sm:$0xff]   ;;  %s868_s4 = sshll.u32 %s405_s1, 4  ;;  %s2176_s4 = int_to_ptr.vmem [resolvable:$true] %s868_s4 }
  0xe6   : > { %1148 = vmatpush3.bf16.msra.mxu1 %v1341_v6  ;;  %1128 = vmatpush3.bf16.msra.mxu0 %v1349_v17  ;;  %v1351_v26 = vld [vmem:[#allocation11 + $0x10] sm:$0xff]   ;;  %v1346_v30 = vld [vmem:[%s2099_s13 + $0x28] sm:$0xff]   ;;  %v1352_v32 = vld [vmem:[#allocation11 + $0x18] sm:$0xff]   ;;  %s1094_s12 = sshll.u32 %s1654_s9, 7  ;;  %s2322_s20 = sld [smem:[#allocation36_spill]] }
  0xe7   : > { %v553_v4 = vadd.s32 8, %v552_v2  ;;  %v556_v5 = vadd.s32 %v555_v3, %v552_v2  ;;  %1149 = vmatprep.subr.bf16.mxu1 %v1673_v1  ;;  %v569_v11 = vmul.u32 2246822507, %v559_v7  ;;  %1129 = vmatprep.subr.bf16.mxu0 %v1673_v1  ;;  %v1347_v35 = vld [vmem:[%s2099_s13 + $0x30] sm:$0xff]   ;;  %v1353_v39 = vld [vmem:[#allocation11 + $0x20] sm:$0xff]   ;;  %v1348_v43 = vld [vmem:[%s2099_s13 + $0x38] sm:$0xff]  }
  0xe8   : > { %v422_v45 = vld [vmem:[%s344_s25] sm:$0xf]  ;;  %v1354_v46 = vld [vmem:[#allocation11 + $0x28] sm:$0xff]   ;;  %v423_v48 = vld [vmem:[%s344_s25 + $0x4] sm:$0xf]  ;;  %s2185_s2 = scalar_lea.sflag [#allocation10], %s342_s19 }
  0xe9   : > { %s563_s16 = sld [smem:[#allocation6 + %s2117_s5]]  ;;  %v564_v9 = vmul.u32 2654435761, %v556_v5  ;;  %v557_v10 = vadd.s32 %v555_v3, %v553_v4  ;;  %v1355_v50 = vld [vmem:[#allocation11 + $0x30] sm:$0xff]   ;;  %v1356_v53 = vld [vmem:[#allocation11 + $0x38] sm:$0xff]   ;;  %v1048_v54 = vcombine.low %v422_v45, %v423_v48  ;;  %v1358_v55 = vld [vmem:[%s2106_s3] sm:$0xff]  }
  0xea   : > { %1150 = vmatpush3.bf16.msra.mxu1 %v1342_v8  ;;  %1130 = vmatpush3.bf16.msra.mxu0 %v1350_v21  ;;  %s2134_s18 = sld [smem:[#allocation7 + %s2117_s5]]  ;;  %v1359_v56 = vld [vmem:[%s2106_s3 + $0x8] sm:$0xff]   ;;  %v1360_v57 = vld [vmem:[%s2106_s3 + $0x10] sm:$0xff]   ;;  %v1361_v58 = vld [vmem:[%s2106_s3 + $0x18] sm:$0xff]   ;;  %s1518_s9 = scalar_lea.vmem %s2176_s4, 128 }
  0xeb   : > { %1151 = vmatprep.subr.bf16.mxu1 %v1673_v1  ;;  %v565_v15 = vmul.u32 2654435761, %v557_v10  ;;  %1131 = vmatprep.subr.bf16.mxu0 %v1673_v1  ;;  %v1362_v59 = vld [vmem:[%s2106_s3 + $0x20] sm:$0xff]   ;;  %v1363_v60 = vld [vmem:[%s2106_s3 + $0x28] sm:$0xff]   ;;  %v1364_v61 = vld [vmem:[%s2106_s3 + $0x30] sm:$0xff]   ;;  %p1519_p10 = scmp.ne.s32.totalorder %s2176_s4, %s1518_s9  ;;  %p2323_p2 = scmp.ne.s32.totalorder %s2301_s0, 0 }
  0xec   : > { %v1365_v62 = vld [vmem:[%s2106_s3 + $0x38] sm:$0xff]   ;;  %v1081_v6 = vld [vmem:[%s2321_s27] ss:$0 sm:$0xff]  ;;  %s2181_s22 = scalar_lea.hbm %s2322_s20, %s1094_s12  ;;  %s1675_s13 = smov [#allocation15]  }
  0xed   : > { %p1520_p5 = pnand %p1519_p10, %p2323_p2  ;;  %s1522_s21 = sshll.u32 %s1675_s13, 4  ;;  %s1523_s21 = int_to_ptr.vmem [resolvable:$false] %s1522_s21 }
  0xee   : > { %1152 = vmatpush3.bf16.msra.mxu1 %v1343_v12  ;;  %1132 = vmatpush3.bf16.msra.mxu0 %v1351_v26  ;;  %s1524_s15 = scalar_lea.vmem %s1523_s21, 256  ;;  %p1525_p12 = scmp.lt.s32.totalorder %s2176_s4, %s1523_s21 }
  0xef   : > { %v566_v13 = vstv %s563_s16  ;;  %1153 = vmatprep.subr.bf16.mxu1 %v1673_v1  ;;  %1133 = vmatprep.subr.bf16.mxu0 %v1673_v1  ;;  %p1521_p8 = pneg %p1520_p5  ;;  %p1526_p9 = scmp.lt.s32.totalorder %s1524_s15, %s1518_s9 }
  0xf0   : > { %v567_v14 = vadd.s32 %v566_v13, %v564_v9  ;;  %v568_v19 = vadd.s32 %v566_v13, %v565_v15  ;;  %v595_v41 = vstv %s2134_s18 }
  0xf1   : > { %p1527_p0 = por %p1526_p9, %p1525_p12 }
  0xf2   : > { %v570_v16 = vadd.s32 %v569_v11, %v567_v14  ;;  %v571_v22 = vadd.s32 %v569_v11, %v568_v19  ;;  %1154 = vmatpush3.bf16.msra.mxu1 %v1344_v18  ;;  %1134 = vmatpush3.bf16.msra.mxu0 %v1352_v32 }
  0xf3   : > { %1155 = vmatprep.subr.bf16.mxu1 %v1673_v1  ;;  %1135 = vmatprep.subr.bf16.mxu0 %v1673_v1  ;;  %p1528_p3 = pnand %p1527_p0, %p1521_p8 }
  0xf4   : > { %v1058_v20 = vshrl.u32 %v570_v16, 16  ;;  %v1059_v25 = vshrl.u32 %v571_v22, 16 }
  0xf6   : > { %v576_v24 = vxor.u32 %v1058_v20, %v570_v16  ;;  %v577_v28 = vxor.u32 %v1059_v25, %v571_v22  ;;  %1156 = vmatpush3.bf16.msra.mxu1 %v1345_v23  ;;  %1136 = vmatpush3.bf16.msra.mxu0 %v1353_v39 }
  0xf7   : > { %1157 = vmatprep.subr.bf16.mxu1 %v1673_v1  ;;  %1137 = vmatprep.subr.bf16.mxu0 %v1673_v1 }
  0xf8   : > { %v578_v27 = vmul.u32 2145916205, %v576_v24  ;;  %v579_v31 = vmul.u32 2145916205, %v577_v28 }
  0xfa   : > { %v1060_v29 = vshrl.u32 %v578_v27, 15  ;;  %v1061_v34 = vshrl.u32 %v579_v31, 15  ;;  %1158 = vmatpush3.bf16.msra.mxu1 %v1346_v30  ;;  %1138 = vmatpush3.bf16.msra.mxu0 %v1354_v46 }
  0xfb   : > { %1159 = vmatprep.subr.bf16.mxu1 %v1673_v1  ;;  %1139 = vmatprep.subr.bf16.mxu0 %v1673_v1 }
  0xfc   : > { %v584_v33 = vxor.u32 %v1060_v29, %v578_v27  ;;  %v585_v37 = vxor.u32 %v1061_v34, %v579_v31 }
  0xfe   : > { %v586_v36 = vmul.u32 2221582987, %v584_v33  ;;  %v587_v40 = vmul.u32 2221582987, %v585_v37  ;;  %1160 = vmatpush3.bf16.msra.mxu1 %v1347_v35  ;;  %1140 = vmatpush3.bf16.msra.mxu0 %v1355_v50 }
  0xff   : > { %1161 = vmatprep.subr.bf16.mxu1 %v1673_v1  ;;  %1141 = vmatprep.subr.bf16.mxu0 %v1673_v1 }
 0x100   : > { %v1062_v38 = vshrl.u32 %v586_v36, 16  ;;  %v1063_v44 = vshrl.u32 %v587_v40, 16 }
 0x102   : > { %v592_v42 = vxor.u32 %v1062_v38, %v586_v36  ;;  %v593_v47 = vxor.u32 %v1063_v44, %v587_v40  ;;  %1162 = vmatpush3.bf16.msra.mxu1 %v1348_v43  ;;  %1142 = vmatpush3.bf16.msra.mxu0 %v1356_v53 }
 0x103   : > { %1167 = vmatprep.subr.bf16.mxu0 %v1673_v1 }
 0x104   : > { %vm596_vm1 = vcmp.ge.s32.totalorder %v592_v42, %v595_v41  ;;  %vm597_vm3 = vcmp.ge.s32.totalorder %v593_v47, %v595_v41 }
 0x105   : > { %vm598_vm2 = vmpackc.low %vm596_vm1, %vm596_vm1  ;;  %1144 = vmatmul.mubr.bf16.vlgmr.msra.gmra.mrb[0].mxu0 %v1048_v54 }
 0x106   : > { %v600_v49 = vsel %vm598_vm2, %v422_v45, 0  ;;  %vm599_vm4 = vmpackc.low %vm597_vm3, %vm597_vm3  ;;  %1168 = vmatpush3.bf16.msra.mxu0 %v1358_v55  ;;  %1183 = vmatprep.mubr.msk.bf16.mxu0 %vm1674_vm0, %v1673_v1 }
 0x107   : > { %v601_v51 = vsel %vm599_vm4, %v423_v48, 0  ;;  %1169 = vmatprep.subr.bf16.mxu0 %v1673_v1 }
 0x108   : > { %v1064_v52 = vcombine.low %v600_v49, %v601_v51 }
 0x10a   : > { %1164 = vmatmul.mubr.bf16.vlgmr.msra.gmra.mrb[0].mxu1 %v1064_v52  ;;  %1170 = vmatpush3.bf16.msra.mxu0 %v1359_v56 }
 0x10b   : > { %1171 = vmatprep.subr.bf16.mxu0 %v1673_v1 }
 0x10e   : > { %1172 = vmatpush3.bf16.msra.mxu0 %v1360_v57 }
 0x10f   : > { %1173 = vmatprep.subr.bf16.mxu0 %v1673_v1 }
 0x112   : > { %1174 = vmatpush3.bf16.msra.mxu0 %v1361_v58 }
 0x113   : > { %1175 = vmatprep.subr.bf16.mxu0 %v1673_v1 }
 0x116   : > { %1176 = vmatpush3.bf16.msra.mxu0 %v1362_v59 }
 0x117   : > { %1177 = vmatprep.subr.bf16.mxu0 %v1673_v1 }
 0x11a   : > { %1178 = vmatpush3.bf16.msra.mxu0 %v1363_v60 }
 0x11b   : > { %1179 = vmatprep.subr.bf16.mxu0 %v1673_v1 }
 0x11e   : > { %1180 = vmatpush3.bf16.msra.mxu0 %v1364_v61 }
 0x11f   : > { %1181 = vmatprep.subr.bf16.mxu0 %v1673_v1 }
 0x122   : > { %1182 = vmatpush3.bf16.msra.mxu0 %v1365_v62 }
 0x1dd   : > { %v708_v63 = vpop.f32.mrb[0].mxu1 }
 0x1de   : > { %v1165_v0 = vpop.f32.mrb[1].mxu1 }
 0x1df   : > { %v711_v2 = vpop.f32.mrb[2].mxu1 }
 0x1e0   : > { %v724_v3 = vpack.c.bf16 %v711_v2, %v708_v63  ;;  %v1166_v4 = vpop.f32.mrb[3].mxu1 }
 0x1e2   : > { %1184 = vmatmul.mubr.bf16.vlgmr.msra.gmra.mrb[0].mxu0 %v724_v3 }
 0x2b5   : > { %v823_v5 = vpop.f32.mrb[0].mxu0 }
 0x2b6   : > { %v1185_v7 = vpop.f32.mrb[1].mxu0  ;;  %v1187_v8 = vadd.f32 %v1081_v6, %v823_v5 }
 0x2b7   : > { %v826_v1 = vpop.f32.mrb[2].mxu0 }
 0x2b8   : > { %v1188_v9 = vadd.f32 %v1081_v6, %v826_v1  ;;  %v1186_v10 = vpop.f32.mrb[3].mxu0 }
 0x2ba   : > { %v1098_v11 = vpack.c.bf16 %v1188_v9, %v1187_v8 }
 0x2bc   : > { %1099 = vst [vmem:[%s405_s1] sm:$0xff] %v1098_v11  }
 0x2bd   : > { %1531 = shalt.err (!%p1528_p3)
}
 0x2be   : > { %s1532_s19 = scalar_lea.hbm %s2181_s22, 128  ;;  %s1536_s5 = scalar_lea.hbm %s2322_s20, 256 }
 0x2bf   : > { %p1533_p4 = scmp.ne.s32.totalorder %s2181_s22, %s1532_s19  ;;  %p1537_p7 = scmp.lt.u32.totalorder %s2181_s22, %s2322_s20 }
 0x2c0   : > { %p1538_p11 = scmp.lt.u32.totalorder %s1536_s5, %s1532_s19  ;;  %p1540_p10 = scmp.lt.u32.totalorder %s1532_s19, %s2181_s22 }
 0x2c1   : > { %p1534_p6 = pnand %p1533_p4, %p2323_p2 }
 0x2c2   : > { %p1539_p1 = por %p1538_p11, %p1537_p7 }
 0x2c3   : > { %p1535_p13 = pneg %p1534_p6 }
 0x2c4   : > { %p1541_p5 = por %p1540_p10, %p1539_p1 }
 0x2c6   : > { %p1542_p8 = pnand %p1541_p5, %p1535_p13 }
 0x2c8   : > { %1545 = shalt.err (!%p1542_p8)
}
 0x2c9   : > { %s1676_s17 = smov 64   ;;  %s1677_s6 = smov 4  }
 0x2ca   : > { %1207 = dma.vmem_to_hbm [thread:$0]  (%p2323_p2), %s2176_s4, 128, %s2181_s22, %s2185_s2, %s1676_s17, %s1676_s17, %s1677_s6  }
 0x2cb PF: > { %s2324_s27 = sld [smem:[#allocation30_spill]]  ;;  %s883_s1 = sand.u32 1, %s1642_s28  }
 0x2cc   : > { %p2326_p9 = scmp.ge.s32.totalorder %s1662_s11, 2  ;;  %s884_s12 = scalar_lea.sflag [#allocation10], %s883_s1 }
 0x2d1   : > { %p2325_p12 = scmp.ne.s32.totalorder %s2324_s27, 0 }
 0x2d3   : > { %p1228_p0 = pnand %p2326_p9, %p2325_p12 }
 0x2d5   : > { %1613 = dma.done.wait (!%p1228_p0), %s884_s12, 128  }
 0x2d6   : > { %1615 = vsyncadd (!%p1228_p0), %s884_s12, 4294967168  ;;  %s37_s11 = sadd.s32 1, %s1662_s11   ;;  %s2327_s0 = sld [smem:[#allocation26_spill]] }
 0x2d7   : > { %p34_p3 = scmp.ge.s32.totalorder %s37_s11, 4   ;;  %s2328_s27 = sld [smem:[#allocation31_spill]] }
 0x2d8   : > { %s2329_s4 = sld [smem:[#allocation27_spill]]  ;;  %s2330_s14 = sld [smem:[#allocation29_spill]] }
 0x2d9   : > { %s2331_s22 = sld [smem:[#allocation28_spill]]  ;;  %s2332_s2 = smov %s1622_s23 }
 0x2da   : > { %s2333_s23 = smov %s1626_s24  ;;  %s2334_s24 = smov %s2038_s30 }
 0x2db   : > { %s2335_s25 = smov %s1634_s26  ;;  %s2337_s28 = smov %s1646_s29 }
 0x2dc   : > { %s2336_s26 = smov %s2327_s0  ;;  %s2340_s9 = smov %s1658_s10 }
 0x2dd   :  { %36 = sbr.rel (!%p34_p3) target bundleno = 44 (0x2c), region = 131 }
 0x2de   : > { %s2338_s29 = smov %s2329_s4  ;;  %s2339_s30 = smov %s2330_s14 }
 0x2df   : > { %s2341_s10 = smov %s2331_s22 }
 0x2e4   :  { %889 = vsyncpa [#allocation9], 1 }
 0x2e5   :  { %891 = vsyncpa [#allocation9 + $0x1], 1 }
 0x2e6   :  { %892 = vsyncpa [#allocation12], 1 }
 0x2e7   :  { %893 = vsyncpa [#allocation10], 1 }
 0x2e8   :  { %895 = vsyncpa [#allocation10 + $0x1], 1 }

</bundles_post_ra>
